<compile_context>
chip_gen: v5e
topology: v5e:2x2
jax: 0.10.0
libtpu: 0.0.40
codegen_flags: <defaults>
</compile_context>

<pallas_src>
import jax
import jax.numpy as jnp
from jax.experimental import pallas as pl
from jax.experimental.pallas import tpu as pltpu

ROW_TILE_MAX = 2048   # rows per block (bf16 input / f32 output stay well under VMEM)
TARGET_BLOCKS = 8     # aim for >= this many row blocks (v7x has 2 TCs; >=2 required)


def _round_up(x, m):
    return ((x + m - 1) // m) * m


def _mlp_kernel(x_ref, w1_ref, b1_ref, w2_ref, b2_ref, o_ref):
    # Fused per-row-tile MLP: hidden = relu(x @ W1 + b1); out = hidden @ W2 + b2
    # x/W1/W2 are bf16 (MXU-native), accumulation + epilogue in f32.
    x = x_ref[...]                                                   # (TR, N) bf16
    h = jnp.dot(x, w1_ref[...], preferred_element_type=jnp.float32)  # (TR, H) f32
    h = jnp.maximum(h + b1_ref[...], 0.0)                            # f32 epilogue
    o = jnp.dot(h.astype(jnp.bfloat16), w2_ref[...],
                preferred_element_type=jnp.float32)                  # (TR, N) f32
    o_ref[...] = (o + b2_ref[...]).astype(o_ref.dtype)


def maml_causal_discovery_forward(x, w1, b1, w2, b2):
    """Forward pass of MAMLForCausalDiscovery (== base model forward).

    x  : [batch, seq, num_nodes] float32
    w1 : [num_nodes, hidden],  b1 : [hidden]   (nn.Linear-style 1-D bias)
    w2 : [hidden, num_nodes],  b2 : [num_nodes]
    returns [batch, seq, num_nodes] float32
    """
    batch, seq, num_nodes = x.shape
    hidden = w1.shape[1]
    rows = batch * seq

    # ---- layout glue (plain JAX; no HBM padding passes) --------------------
    x2d = x.reshape(rows, num_nodes).astype(jnp.bfloat16)
    w1b = w1.astype(jnp.bfloat16)
    w2b = w2.astype(jnp.bfloat16)
    b1r = b1.reshape(1, hidden).astype(jnp.float32)       # keep biases f32
    b2r = b2.reshape(1, num_nodes).astype(jnp.float32)

    # Row tile: multiple of 8, capped so there are >= TARGET_BLOCKS (>= 2) blocks
    # to feed both v7x TensorCores, and capped at ROW_TILE_MAX for VMEM budget.
    tr = _round_up(pl.cdiv(rows, TARGET_BLOCKS), 8)
    tr = max(8, min(ROW_TILE_MAX, tr))
    grid = (pl.cdiv(rows, tr),)                            # ragged last block is fine

    # Real (unpadded) traffic / flops: x bf16 in, out f32 out, tiny bf16 weights.
    cost = pl.CostEstimate(
        flops=2 * rows * (num_nodes * hidden + hidden * num_nodes),
        transcendentals=0,
        bytes_accessed=(2 * rows * num_nodes                       # x   (bf16)
                        + 4 * rows * num_nodes                     # out (f32)
                        + 2 * (num_nodes * hidden + hidden * num_nodes)  # W1, W2
                        + 4 * (hidden + num_nodes)),               # b1, b2 (f32)
    )

    out2d = pl.pallas_call(
        _mlp_kernel,
        out_shape=jax.ShapeDtypeStruct((rows, num_nodes), jnp.float32),
        grid_spec=pl.GridSpec(
            grid=grid,
            in_specs=[
                pl.BlockSpec((tr, num_nodes), lambda i: (i, 0)),    # x: tiled rows
                pl.BlockSpec((num_nodes, hidden), lambda i: (0, 0)),  # W1: resident
                pl.BlockSpec((1, hidden), lambda i: (0, 0)),          # b1: resident
                pl.BlockSpec((hidden, num_nodes), lambda i: (0, 0)),  # W2: resident
                pl.BlockSpec((1, num_nodes), lambda i: (0, 0)),       # b2: resident
            ],
            out_specs=pl.BlockSpec((tr, num_nodes), lambda i: (i, 0)),
        ),
        compiler_params=pltpu.CompilerParams(
            dimension_semantics=("parallel",),       # row blocks independent (v7x 2 TCs)
            vmem_limit_bytes=32 * 1024 * 1024,       # safe on v7x's 64 MiB VMEM
        ),
        cost_estimate=cost,
    )(x2d, w1b, b1r, w2b, b2r)

    return out2d.reshape(batch, seq, num_nodes)


if __name__ == "__main__":
    # Small shapes consistent with the module's [batch, seq, num_nodes] convention.
    batch, seq, num_nodes, hidden = 2, 8, 16, 32

    key = jax.random.PRNGKey(0)
    kx, kw1, kb1, kw2, kb2 = jax.random.split(key, 5)

    x = jax.random.normal(kx, (batch, seq, num_nodes), dtype=jnp.float32)

    # Deterministic synthetic parameter init (nn.Linear-style fan-in scaling,
    # 1-D biases like torch.nn.Linear).
    w1 = jax.random.normal(kw1, (num_nodes, hidden), dtype=jnp.float32) / jnp.sqrt(num_nodes)
    b1 = jax.random.normal(kb1, (hidden,), dtype=jnp.float32) * 0.01
    w2 = jax.random.normal(kw2, (hidden, num_nodes), dtype=jnp.float32) / jnp.sqrt(hidden)
    b2 = jax.random.normal(kb2, (num_nodes,), dtype=jnp.float32) * 0.01

    out = maml_causal_discovery_forward(x, w1, b1, w2, b2)
    out = jax.block_until_ready(out)

    # Reference check in plain JAX (f32 math). bf16 MXU operands -> loose tolerance.
    ref = jnp.maximum(x.reshape(-1, num_nodes) @ w1 + b1[None, :], 0.0) @ w2 + b2[None, :]
    ref = ref.reshape(batch, seq, num_nodes)
    assert out.shape == (batch, seq, num_nodes)
    assert jnp.allclose(out, ref, atol=5e-2, rtol=5e-2)

    print("KERNEL_OK")
</pallas_src>

<mosaic_0001>
module attributes {stable_mosaic.version = 11 : i64} {
  func.func @_mlp_kernel(%arg0: i32, %arg1: memref<8x16xbf16, #tpu.memory_space<vmem>>, %arg2: memref<16x32xbf16, #tpu.memory_space<vmem>>, %arg3: memref<1x32xf32, #tpu.memory_space<vmem>>, %arg4: memref<32x16xbf16, #tpu.memory_space<vmem>>, %arg5: memref<1x16xf32, #tpu.memory_space<vmem>>, %arg6: memref<8x16xf32, #tpu.memory_space<vmem>>) attributes {dimension_semantics = [#tpu.dimension_semantics<parallel>], iteration_bounds = array<i64: 2>, scalar_prefetch = 0 : i64, scratch_operands = 0 : i64, tpu.core_type = #tpu.core_type<tc>, window_params = [{transform_indices = @transform_0, window_bounds = array<i64: 8, 16>}, {pipeline_mode = #tpu.pipeline_mode<synchronous>, transform_indices = @transform_1, window_bounds = array<i64: 16, 32>}, {pipeline_mode = #tpu.pipeline_mode<synchronous>, transform_indices = @transform_2, window_bounds = array<i64: 1, 32>}, {pipeline_mode = #tpu.pipeline_mode<synchronous>, transform_indices = @transform_3, window_bounds = array<i64: 32, 16>}, {pipeline_mode = #tpu.pipeline_mode<synchronous>, transform_indices = @transform_4, window_bounds = array<i64: 1, 16>}, {transform_indices = @transform_5, window_bounds = array<i64: 8, 16>}]} {
    %c0 = arith.constant 0 : index
    %c0_0 = arith.constant 0 : index
    %0 = vector.load %arg1[%c0, %c0_0] : memref<8x16xbf16, #tpu.memory_space<vmem>>, vector<8x16xbf16>
    %c0_1 = arith.constant 0 : index
    %c0_2 = arith.constant 0 : index
    %1 = vector.load %arg2[%c0_1, %c0_2] : memref<16x32xbf16, #tpu.memory_space<vmem>>, vector<16x32xbf16>
    %cst = arith.constant dense<0.000000e+00> : vector<8x32xf32>
    %2 = tpu.matmul %0, %1, %cst {dimension_numbers = #tpu.dot_dimension_numbers<[1], [0], [0], [1], [0, 0, 1, 1], [], []>} : vector<8x16xbf16>, vector<16x32xbf16>, vector<8x32xf32> -> vector<8x32xf32>
    %c0_3 = arith.constant 0 : index
    %c0_4 = arith.constant 0 : index
    %3 = vector.load %arg3[%c0_3, %c0_4] : memref<1x32xf32, #tpu.memory_space<vmem>>, vector<1x32xf32>
    %4 = vector.broadcast %3 : vector<1x32xf32> to vector<8x32xf32>
    %5 = arith.addf %2, %4 : vector<8x32xf32>
    %cst_5 = arith.constant 0.000000e+00 : f32
    %6 = vector.broadcast %cst_5 : f32 to vector<8x32xf32>
    %7 = arith.maximumf %5, %6 : vector<8x32xf32>
    %8 = arith.truncf %7 : vector<8x32xf32> to vector<8x32xbf16>
    %c0_6 = arith.constant 0 : index
    %c0_7 = arith.constant 0 : index
    %9 = vector.load %arg4[%c0_6, %c0_7] : memref<32x16xbf16, #tpu.memory_space<vmem>>, vector<32x16xbf16>
    %cst_8 = arith.constant dense<0.000000e+00> : vector<8x16xf32>
    %10 = tpu.matmul %8, %9, %cst_8 {dimension_numbers = #tpu.dot_dimension_numbers<[1], [0], [0], [1], [0, 0, 1, 1], [], []>} : vector<8x32xbf16>, vector<32x16xbf16>, vector<8x16xf32> -> vector<8x16xf32>
    %c0_9 = arith.constant 0 : index
    %c0_10 = arith.constant 0 : index
    %11 = vector.load %arg5[%c0_9, %c0_10] : memref<1x16xf32, #tpu.memory_space<vmem>>, vector<1x16xf32>
    %12 = vector.broadcast %11 : vector<1x16xf32> to vector<8x16xf32>
    %13 = arith.addf %10, %12 : vector<8x16xf32>
    %c0_11 = arith.constant 0 : index
    %c0_12 = arith.constant 0 : index
    %14 = vector.load %arg6[%c0_11, %c0_12] : memref<8x16xf32, #tpu.memory_space<vmem>>, vector<8x16xf32>
    tpu.vector_store %arg6[%c0_11, %c0_12], %13 {strides = array<i32>} : memref<8x16xf32, #tpu.memory_space<vmem>>, vector<8x16xf32>,
    return
  }
  func.func @transform_0(%arg0: i32) -> (i32, i32) {
    %c0_i32 = arith.constant 0 : i32
    %c0_i32_0 = arith.constant 0 : i32
    return %arg0, %c0_i32 : i32, i32
  }
  func.func @transform_1(%arg0: i32) -> (i32, i32) {
    %c0_i32 = arith.constant 0 : i32
    %c0_i32_0 = arith.constant 0 : i32
    %c0_i32_1 = arith.constant 0 : i32
    return %c0_i32, %c0_i32_0 : i32, i32
  }
  func.func @transform_2(%arg0: i32) -> (i32, i32) {
    %c0_i32 = arith.constant 0 : i32
    %c0_i32_0 = arith.constant 0 : i32
    %c0_i32_1 = arith.constant 0 : i32
    return %c0_i32, %c0_i32_0 : i32, i32
  }
  func.func @transform_3(%arg0: i32) -> (i32, i32) {
    %c0_i32 = arith.constant 0 : i32
    %c0_i32_0 = arith.constant 0 : i32
    %c0_i32_1 = arith.constant 0 : i32
    return %c0_i32, %c0_i32_0 : i32, i32
  }
  func.func @transform_4(%arg0: i32) -> (i32, i32) {
    %c0_i32 = arith.constant 0 : i32
    %c0_i32_0 = arith.constant 0 : i32
    %c0_i32_1 = arith.constant 0 : i32
    return %c0_i32, %c0_i32_0 : i32, i32
  }
  func.func @transform_5(%arg0: i32) -> (i32, i32) {
    %c0_i32 = arith.constant 0 : i32
    %c0_i32_0 = arith.constant 0 : i32
    return %arg0, %c0_i32 : i32, i32
  }
}

</mosaic_0001>

<bundles_post_ra>
// kernel: tpu_custom_call.1
= control target key start
LH: loop header
LB: loop body
LE: loop exit
PB: predicated region body
PF: predicated region fallthrough
CT: control target
= control target key end

     0   :  { %10 = vsyncpa [#allocation3], 0  ;;  %s630_s0 = inlined_call_operand.vmem [shape: bf16[16,16], index: 0, kind: input, shape index: {}]   ;;  %s631_s1 = inlined_call_operand.vmem [shape: bf16[16,32], index: 1, kind: input, shape index: {}]   ;;  %s632_s2 = inlined_call_operand.vmem [shape: f32[1,32], index: 2, kind: input, shape index: {}]   ;;  %s633_s3 = inlined_call_operand.vmem [shape: bf16[32,16], index: 3, kind: input, shape index: {}]   ;;  %s634_s4 = inlined_call_operand.vmem [shape: f32[1,16], index: 4, kind: input, shape index: {}]   ;;  %s635_s5 = inlined_call_operand.hbm [shape: f32[16,16], index: 5, kind: output, shape index: {}]  }
   0x1   :  { %12 = vsyncpa [#allocation3 + $0x1], 0  ;;  %s528_s18 = smov 0   ;;  %s530_s19 = smov 0  }
   0x2   :  { %s532_s20 = smov 0   ;;  %s534_s21 = smov 0  }
   0x3 LB: > { %s549_s22 = sadd.s32 4294967295, %s496_s21   ;;  %s366_s23 = sadd.s32 4294967294, %s496_s21   ;;  %s496_s21 = sphi %s534_s21, %s641_s21   ;;  %s492_s20 = sphi %s532_s20, %s640_s20   ;;  %s488_s19 = sphi %s530_s19, %s639_s19   ;;  %s484_s18 = sphi %s528_s18, %s638_s18  }
   0x4   : > { %s553_s24 = sadd.s32 1, %s496_s21   ;;  %s135_s25 = sadd.s32 1, %s492_s20 }
   0x5   : > { %s132_s26 = ssub.s32 %s496_s21, %s553_s24  ;;  %p145_p0 = scmp.ne.s32.totalorder %s492_s20, %s488_s19 }
   0x6   : > { %p133_p1 = scmp.eq.s32.totalorder %s132_s26, 0  ;;  %p146_p2 = scmp.eq.s32.totalorder %s549_s22, 1 }
   0x7   : > { %p151_p3 = scmp.ne.s32.totalorder %s488_s19, %s484_s18  ;;  %p152_p4 = scmp.eq.s32.totalorder %s366_s23, 1 }
   0x8   : > { %s564_s27 = scalar_select %p133_p1, %s492_s20, %s135_s25  }
   0x9   : > { %p566_p5 = por %p146_p2, %p145_p0  ;;  %p570_p6 = por %p152_p4, %p151_p3 }
   0xa   : > { %p369_p7 = scmp.ge.s32.totalorder %s496_s21, 1  ;;  %p189_p8 = scmp.lt.s32.totalorder %s496_s21, 3 }
   0xc   : > { %p190_p9 = pnand %p369_p7, %p189_p8 }
   0xd   : > { %p216_p10 = scmp.lt.s32.totalorder (!%p190_p9), %s549_s22, 1  ;;  %s213_s23 = sand.u32 (!%p190_p9), 1, %s488_s19  }
   0xe   : > { %193 = sbr.rel (%p190_p9) target bundleno = 290 (0x122), region = 40  ;;  %s387_s25 = sshll.u32 (!%p190_p9), %s549_s22, 3 }
   0xf   : > { %s370_s26 = sshll.u32 (!%p190_p9), %s213_s23, 3  ;;  %s454_s17 = scalar_lea.hbm (!%p190_p9), %s635_s5, 16 }
  0x10   : > { %s215_s10 = scalar_lea.vmem (!%p190_p9), [#allocation2], %s370_s26 }
  0x13   : > { %v390_v0 = vld [vmem:[%s631_s1] sm:$0xff]  ;;  %s217_s7 = scalar_select %p216_p10, %s549_s22, 1  ;;  %vm234_vm0 = vcmask 130048   ;;  %v392_v2 = vld [vmem:[%s633_s3 + $0x8] sm:$0xff]  ;;  %vm273_vm1 = vcmask 261120  }
  0x14   : > { %245 = vmatpush.bf16.msra.mxu0 %v390_v0  ;;  %283 = vmatpush.bf16.msra.mxu1 %v392_v2  ;;  %v391_v3 = vld [vmem:[%s633_s3] sm:$0xff]  ;;  %s292_s22 = scalar_lea.sflag [#allocation3], %s213_s23 }
  0x15   : > { %s371_s8 = sshll.u32 %s217_s7, 2  ;;  %v432_v4 = vld [vmem:[%s632_s2] ss:$0 sm:$0xff]  ;;  %s302_s7 = scalar_lea.hbm %s635_s5, %s387_s25 }
  0x16   : > { %s219_s11 = scalar_lea.vmem %s630_s0, %s371_s8  ;;  %v433_v10 = vld [vmem:[%s634_s4] ss:$0 sm:$0xff]  ;;  %s306_s12 = sshll.u32 %s302_s7, 4  ;;  %s307_s12 = int_to_ptr.hbm [resolvable:$true] %s306_s12 }
  0x17   : > { %v221_v1 = vld [vmem:[%s219_s11] sm:$0xf]  ;;  %s304_s11 = sshll.u32 %s215_s10, 4  ;;  %s448_s13 = sshra.s32 %s307_s12, 4  ;;  %s305_s11 = int_to_ptr.vmem [resolvable:$true] %s304_s11  ;;  %s449_s13 = int_to_ptr.hbm [resolvable:$true] %s448_s13 }
  0x18   : > { %376 = vmatmul.msk.bf16.vlgmr.msra.gmra.mxu0 %vm234_vm0, %v221_v1  ;;  %284 = vmatpush.bf16.msra.mxu1 %v391_v3  ;;  %s450_s14 = scalar_lea.hbm %s449_s13, 8  ;;  %p455_p0 = scmp.lt.s32.totalorder %s449_s13, %s635_s5 }
  0x19   : > { %p451_p11 = scmp.ne.s32.totalorder %s449_s13, %s450_s14  ;;  %p456_p1 = scmp.lt.s32.totalorder %s454_s17, %s450_s14 }
  0x1b   : > { %p452_p12 = pnand %p451_p11, %p566_p5  ;;  %p457_p2 = por %p456_p1, %p455_p0 }
  0x1d   : > { %p453_p13 = pneg %p452_p12 }
  0x1f   : > { %p458_p3 = pnand %p457_p2, %p453_p13 }
  0x95   : > { %v247_v5 = vpop.f32.mrf.mxu0 }
  0x96   : > { %v248_v6 = vadd.f32 %v432_v4, %v247_v5 }
  0x98   : > { %v251_v7 = vmax.f32 %v248_v6, 0.0 }
  0x9a   : > { %v252_v8 = vpack.c.bf16 %v251_v7, %v251_v7 }
  0x9c   : > { %385 = vmatmul.msk.bf16.vlgmr.msra.gmra.mxu1 %vm273_vm1, %v252_v8 }
  0x9d   : > { %v249_v9 = vpop.f32.mrf.mxu0 }
 0x119   : > { %v286_v11 = vpop.f32.mrf.mxu1 }
 0x11a   : > { %v287_v12 = vadd.f32 %v433_v10, %v286_v11 }
 0x11c   : > { %290 = vst.msk [vmem:[%s215_s10] sm:$0xff] %vm234_vm0, %v287_v12 }
 0x11d   : > { %461 = shalt.err (!%p458_p3)
}
 0x11e   : > { %393 = dma.vmem_to_hbm [thread:$0]  (%p566_p5), %s305_s11, 128, %s307_s12, %s292_s22  }
 0x121   : > { %v288_v13 = vpop.f32.mrf.mxu1 }
 0x122 PF: > { %p399_p4 = scmp.ge.s32.totalorder %s496_s21, 2  ;;  %s318_s23 = sand.u32 1, %s484_s18  }
 0x123   : > { %s319_s30 = scalar_lea.sflag [#allocation3], %s318_s23 }
 0x124   : > { %p396_p7 = pnand %p399_p4, %p570_p6 }
 0x126   : > { %p397_p8 = pneg %p396_p7 }
 0x128   : > { %479 = dma.done.wait (%p397_p8), %s319_s30, 128  }
 0x129   : > { %481 = vsyncadd (%p397_p8), %s319_s30, 4294967168  ;;  %p15_p9 = scmp.ge.s32.totalorder %s553_s24, 4   ;;  %s638_s18 = smov %s488_s19 }
 0x12a   : > { %s639_s19 = smov %s492_s20  ;;  %s640_s20 = smov %s564_s27 }
 0x12b   : > { %s641_s21 = smov %s553_s24  ;;  %17 = sbr.rel (!%p15_p9) target bundleno = 3 (0x3), region = 75 }
 0x130   :  { %325 = vsyncpa [#allocation3], 1 }
 0x131   :  { %327 = vsyncpa [#allocation3 + $0x1], 1 }

</bundles_post_ra>
